<compile_context>
chip_gen: v6e
topology: v6e:2x2x1
jax: 0.10.0
libtpu: 0.0.40
codegen_flags: <defaults>
</compile_context>

<pallas_src>
import functools

import jax
import jax.numpy as jnp
from jax.experimental import pallas as pl
from jax.experimental.pallas import tpu as pltpu


_VMEM_LIMIT = 48 * 1024 * 1024      # explicit scoped-VMEM limit; < v7x 64 MiB physical
_WORKSET_BUDGET = 36 * 1024 * 1024  # per-step working-set target (headroom under limit)


def _round_up(v, m):
    return ((v + m - 1) // m) * m


def _params_vmem_bytes(n_rows):
    # A (rows, k) f32 table in VMEM pads the lane dim to 128 -> 512 B per row
    # (8-row sublane padding + slack for block-rounding of the row count).
    return (_round_up(max(n_rows, 8), 8) + 512) * 128 * 4


def _plan_row_block(B, N, itemsize, budget):
    """Rows per block for the resident-image path; 0 => use the streaming path."""
    budget = budget - _params_vmem_bytes(B)
    if budget <= 0:
        return 0
    # Per-row working set: double-buffered input + output blocks + ~2 f32 temps.
    per_row = N * (2 * itemsize + 2 * itemsize + 2 * 4)
    max_rows = budget // per_row
    if B <= 8:
        return B if max_rows >= B else 0
    if max_rows < 8:
        return 0
    # Keep >= 2 grid steps so the "parallel" axis can shard across v7x's 2 TCs.
    half = max(8, ((B // 2) // 8) * 8)
    return max(8, (min(max_rows, half) // 8) * 8)


def _plan_stream_blocks(B, N, itemsize, budget):
    """(row, lane) block sizes for the streaming (precomputed-mean) path."""
    bt = B if B <= 8 else 8
    budget = max(budget - _params_vmem_bytes(B), 16 * 1024)
    per_lane = bt * (2 * itemsize + 2 * itemsize + 2 * 4)
    lt = max(128, (budget // per_lane // 128) * 128)
    if lt >= N:
        lt = N  # full-dim lane block (allowed even when N % 128 != 0)
    return bt, lt


def _aug_mean_kernel(params_ref, x_ref, o_ref, *, bt, inv_n):
    """Augment `bt` whole images (one lane-dense row per image).

    params_ref : VMEM (Bp, 3) f32, resident across the grid -- [scale, shift, contrast].
    x_ref      : VMEM (bt, N) current block of flattened images.
    o_ref      : VMEM (bt, N) output block.
    """
    i = pl.program_id(0)
    p = params_ref[pl.ds(i * bt, bt), :]                   # (bt, 3)
    scale = p[:, 0:1]
    shift = p[:, 1:2]
    contrast = p[:, 2:3]

    # Per-image mean: the block spans the full image row, so no padded lanes.
    mean_x = jnp.sum(x_ref[...].astype(jnp.float32), axis=-1, keepdims=True) * inv_n

    # Brightness (scale, shift) then contrast about the post-brightness mean,
    # folded into a single affine pass y = a*x + b, clipped to [0, 1].
    a = contrast * scale                                   # (bt, 1)
    b = shift + (1.0 - contrast) * scale * mean_x          # (bt, 1)
    y = a * x_ref[...].astype(jnp.float32) + b             # fresh read (no bound f32 temp)
    o_ref[...] = jnp.clip(y, 0.0, 1.0).astype(o_ref.dtype)


def _aug_stream_kernel(ab_ref, x_ref, o_ref, *, bt):
    """Streaming clip(a*x + b) with pre-folded per-image (a, b) (large-image path).

    ab_ref : VMEM (Bp, 2) f32, resident -- [a, b] per image.
    x_ref  : VMEM (bt, Lt) tile of flattened image rows.
    o_ref  : VMEM (bt, Lt) output tile.
    """
    i = pl.program_id(0)
    p = ab_ref[pl.ds(i * bt, bt), :]                       # (bt, 2)
    a = p[:, 0:1]
    b = p[:, 1:2]
    y = a * x_ref[...].astype(jnp.float32) + b
    o_ref[...] = jnp.clip(y, 0.0, 1.0).astype(o_ref.dtype)


def individual_augmenter(x, key, *, vmem_budget_bytes=None):
    """Apply the per-image augmentation to a (C,H,W) image or (B,C,H,W) batch."""
    single = x.ndim == 3
    if single:
        x = x[None]
    B, C, H, W = x.shape
    N = C * H * W
    dtype = x.dtype
    itemsize = jnp.dtype(dtype).itemsize

    # Per-image "random decisions" (different for every image in the batch):
    #   scale in [0.8, 1.2], shift in [-0.1, 0.1], contrast in [0.75, 1.25]
    u = jax.random.uniform(key, (B, 3), dtype=jnp.float32)
    lo = jnp.array([0.8, -0.1, 0.75], jnp.float32)
    hi = jnp.array([1.2, 0.1, 1.25], jnp.float32)
    params = lo + u * (hi - lo)

    x_flat = x.reshape(B, N)  # contiguous reshape: no copy, no padding

    budget = _WORKSET_BUDGET if vmem_budget_bytes is None else int(vmem_budget_bytes)
    bt = _plan_row_block(B, N, itemsize, budget)

    if bt > 0:
        # --- Resident-image path: in-kernel mean, 1 read + 1 write of x ---
        n_steps = pl.cdiv(B, bt)
        Bp = n_steps * bt
        if Bp != B:
            params = jnp.pad(params, ((0, Bp - B), (0, 0)))  # tiny (Bp,3) pad only
        # TODO(synk): for extremely large batches (B >> 10k) the resident params
        # table would consume significant VMEM; switch it back to per-step blocks.
        kernel = functools.partial(_aug_mean_kernel, bt=bt, inv_n=1.0 / N)
        out_flat = pl.pallas_call(
            kernel,
            out_shape=jax.ShapeDtypeStruct((B, N), dtype),
            grid=(n_steps,),
            in_specs=[
                pl.BlockSpec((Bp, 3), lambda i: (0, 0)),     # resident params (one DMA)
                pl.BlockSpec((bt, N), lambda i: (i, 0)),     # lane-dense image rows
            ],
            out_specs=pl.BlockSpec((bt, N), lambda i: (i, 0)),
            compiler_params=pltpu.CompilerParams(
                dimension_semantics=("parallel",),
                vmem_limit_bytes=_VMEM_LIMIT,
            ),
            cost_estimate=pl.CostEstimate(
                flops=6 * B * N,
                transcendentals=0,
                bytes_accessed=2 * B * N * itemsize,
            ),
        )(params, x_flat)
    else:
        # --- Streaming path (images too large for whole-row VMEM residency) ---
        # Precompute the per-image mean in the wrapper (one extra XLA read of x),
        # fold everything into per-image (a, b), and stream clip(a*x + b) over a
        # fully parallel 2-D (rows x lanes) grid.
        scale = params[:, 0]
        shift = params[:, 1]
        contrast = params[:, 2]
        mean_x = jnp.mean(x_flat, axis=1, dtype=jnp.float32)
        a = contrast * scale
        b = shift + (1.0 - contrast) * scale * mean_x
        ab = jnp.stack([a, b], axis=1)                       # (B, 2) f32

        bt2, lt = _plan_stream_blocks(B, N, itemsize, budget)
        n_row = pl.cdiv(B, bt2)
        n_lane = pl.cdiv(N, lt)
        Bp = n_row * bt2
        if Bp != B:
            ab = jnp.pad(ab, ((0, Bp - B), (0, 0)))          # tiny (Bp,2) pad only
        kernel = functools.partial(_aug_stream_kernel, bt=bt2)
        out_flat = pl.pallas_call(
            kernel,
            out_shape=jax.ShapeDtypeStruct((B, N), dtype),
            grid=(n_row, n_lane),
            in_specs=[
                pl.BlockSpec((Bp, 2), lambda i, j: (0, 0)),  # resident folded params
                pl.BlockSpec((bt2, lt), lambda i, j: (i, j)),
            ],
            out_specs=pl.BlockSpec((bt2, lt), lambda i, j: (i, j)),
            compiler_params=pltpu.CompilerParams(
                dimension_semantics=("parallel", "parallel"),
                vmem_limit_bytes=_VMEM_LIMIT,
            ),
            cost_estimate=pl.CostEstimate(
                flops=4 * B * N,
                transcendentals=0,
                bytes_accessed=2 * B * N * itemsize,
            ),
        )(ab, x_flat)

    out = out_flat.reshape(B, C, H, W)
    return out[0] if single else out


def _reference(x, key):
    """Pure-JAX reference of the same concrete augmentation (for testing)."""
    B = x.shape[0]
    N = x[0].size
    u = jax.random.uniform(key, (B, 3), dtype=jnp.float32)
    lo = jnp.array([0.8, -0.1, 0.75], jnp.float32)
    hi = jnp.array([1.2, 0.1, 1.25], jnp.float32)
    p = lo + u * (hi - lo)
    scale, shift, contrast = p[:, 0:1], p[:, 1:2], p[:, 2:3]
    xf = x.reshape(B, N).astype(jnp.float32)
    yb = scale * xf + shift
    m = scale * jnp.mean(xf, axis=1, keepdims=True) + shift
    y = jnp.clip(m + contrast * (yb - m), 0.0, 1.0)
    return y.reshape(x.shape).astype(x.dtype)


if __name__ == "__main__":
    key = jax.random.PRNGKey(0)
    kx, kp, kp2 = jax.random.split(key, 3)

    # batch of images, NCHW
    B, C, H, W = 2, 4, 16, 16
    x = jax.random.uniform(kx, (B, C, H, W), dtype=jnp.float32)

    # resident-image path
    out = jax.block_until_ready(individual_augmenter(x, kp))
    assert out.shape == (B, C, H, W) and out.dtype == x.dtype
    assert bool(jnp.all(jnp.isfinite(out)))
    assert bool(jnp.all((out >= 0.0) & (out <= 1.0)))
    out_ref = _reference(x, kp)
    assert bool(jnp.allclose(out, out_ref, atol=1e-5, rtol=1e-5))

    # streaming (large-image) path, forced with a tiny working-set budget
    out_stream = jax.block_until_ready(
        individual_augmenter(x, kp, vmem_budget_bytes=1024))
    assert out_stream.shape == (B, C, H, W) and out_stream.dtype == x.dtype
    assert bool(jnp.allclose(out_stream, out_ref, atol=1e-5, rtol=1e-5))

    # single-image path (3-D input), as in the reference forward()
    x1 = x[0]
    out1 = jax.block_until_ready(individual_augmenter(x1, kp2))
    assert out1.shape == (C, H, W) and out1.dtype == x1.dtype
    assert bool(jnp.all((out1 >= 0.0) & (out1 <= 1.0)))

    print("KERNEL_OK")
</pallas_src>

<mosaic_0001>
module attributes {stable_mosaic.version = 11 : i64} {
  func.func @_aug_mean_kernel(%arg0: i32, %arg1: memref<2x3xf32, #tpu.memory_space<vmem>>, %arg2: memref<2x1024xf32, #tpu.memory_space<vmem>>, %arg3: memref<2x1024xf32, #tpu.memory_space<vmem>>) attributes {dimension_semantics = [#tpu.dimension_semantics<parallel>], iteration_bounds = array<i64: 1>, scalar_prefetch = 0 : i64, scratch_operands = 0 : i64, tpu.core_type = #tpu.core_type<tc>, window_params = [{pipeline_mode = #tpu.pipeline_mode<synchronous>, transform_indices = @transform_0, window_bounds = array<i64: 2, 3>}, {transform_indices = @transform_1, window_bounds = array<i64: 2, 1024>}, {transform_indices = @transform_2, window_bounds = array<i64: 2, 1024>}]} {
    %c2_i32 = arith.constant 2 : i32
    %0 = arith.muli %arg0, %c2_i32 : i32
    %1 = arith.index_cast %0 : i32 to index
    %c0 = arith.constant 0 : index
    %2 = vector.load %arg1[%1, %c0] : memref<2x3xf32, #tpu.memory_space<vmem>>, vector<2x3xf32>
    %3 = vector.extract_strided_slice %2 {offsets = [0, 0], sizes = [2, 1], strides = [1, 1]} : vector<2x3xf32> to vector<2x1xf32>
    %4 = vector.extract_strided_slice %2 {offsets = [0, 1], sizes = [2, 1], strides = [1, 1]} : vector<2x3xf32> to vector<2x1xf32>
    %5 = vector.extract_strided_slice %2 {offsets = [0, 2], sizes = [2, 1], strides = [1, 1]} : vector<2x3xf32> to vector<2x1xf32>
    %c0_0 = arith.constant 0 : index
    %c0_1 = arith.constant 0 : index
    %6 = vector.load %arg2[%c0_0, %c0_1] : memref<2x1024xf32, #tpu.memory_space<vmem>>, vector<2x1024xf32>
    %cst = arith.constant dense<0.000000e+00> : vector<2xf32>
    %7 = vector.multi_reduction <add>, %6, %cst [1] : vector<2x1024xf32> to vector<2xf32>
    %8 = vector.shape_cast %7 : vector<2xf32> to vector<2x1xf32>
    %cst_2 = arith.constant 9.765625E-4 : f32
    %9 = vector.broadcast %cst_2 : f32 to vector<2x1xf32>
    %10 = arith.mulf %8, %9 : vector<2x1xf32>
    %11 = arith.mulf %5, %3 : vector<2x1xf32>
    %cst_3 = arith.constant 1.000000e+00 : f32
    %12 = vector.broadcast %cst_3 : f32 to vector<2x1xf32>
    %13 = arith.subf %12, %5 : vector<2x1xf32>
    %14 = arith.mulf %13, %3 : vector<2x1xf32>
    %15 = arith.mulf %14, %10 : vector<2x1xf32>
    %16 = arith.addf %4, %15 : vector<2x1xf32>
    %c0_4 = arith.constant 0 : index
    %c0_5 = arith.constant 0 : index
    %17 = vector.load %arg2[%c0_4, %c0_5] : memref<2x1024xf32, #tpu.memory_space<vmem>>, vector<2x1024xf32>
    %18 = vector.broadcast %11 : vector<2x1xf32> to vector<2x1024xf32>
    %19 = arith.mulf %18, %17 : vector<2x1024xf32>
    %20 = vector.broadcast %16 : vector<2x1xf32> to vector<2x1024xf32>
    %21 = arith.addf %19, %20 : vector<2x1024xf32>
    %cst_6 = arith.constant 0.000000e+00 : f32
    %cst_7 = arith.constant 1.000000e+00 : f32
    %22 = vector.broadcast %cst_6 : f32 to vector<2x1024xf32>
    %23 = arith.maximumf %22, %21 : vector<2x1024xf32>
    %24 = vector.broadcast %cst_7 : f32 to vector<2x1024xf32>
    %25 = arith.minimumf %24, %23 : vector<2x1024xf32>
    %c0_8 = arith.constant 0 : index
    %c0_9 = arith.constant 0 : index
    %26 = vector.load %arg3[%c0_8, %c0_9] : memref<2x1024xf32, #tpu.memory_space<vmem>>, vector<2x1024xf32>
    tpu.vector_store %arg3[%c0_8, %c0_9], %25 {strides = array<i32>} : memref<2x1024xf32, #tpu.memory_space<vmem>>, vector<2x1024xf32>,
    return
  }
  func.func @transform_0(%arg0: i32) -> (i32, i32) {
    %c0_i32 = arith.constant 0 : i32
    %c0_i32_0 = arith.constant 0 : i32
    %c0_i32_1 = arith.constant 0 : i32
    return %c0_i32, %c0_i32_0 : i32, i32
  }
  func.func @transform_1(%arg0: i32) -> (i32, i32) {
    %c0_i32 = arith.constant 0 : i32
    %c0_i32_0 = arith.constant 0 : i32
    return %arg0, %c0_i32 : i32, i32
  }
  func.func @transform_2(%arg0: i32) -> (i32, i32) {
    %c0_i32 = arith.constant 0 : i32
    %c0_i32_0 = arith.constant 0 : i32
    return %arg0, %c0_i32 : i32, i32
  }
}

</mosaic_0001>

<bundles_post_ra>
// kernel: tpu_custom_call.1
= control target key start
LH: loop header
LB: loop body
LE: loop exit
PB: predicated region body
PF: predicated region fallthrough
CT: control target
= control target key end

     0   :  { %7 = vsyncpa [#allocation3], 0  ;;  %s350_s0 = inlined_call_operand.hbm [shape: f32[2,3], index: 0, kind: input, shape index: {}]   ;;  %s351_s1 = inlined_call_operand.hbm [shape: f32[2,1024], index: 1, kind: input, shape index: {}]   ;;  %s352_s2 = inlined_call_operand.hbm [shape: f32[2,1024], index: 2, kind: output, shape index: {}]  }
   0x1   :  { %8 = vsyncpa [#allocation6], 0 }
   0x2   :  { %9 = vsyncpa [#allocation4], 0  ;;  %s300_s9 = smov [#allocation2]   ;;  %s301_s11 = smov [#allocation5]  }
   0x3   :  { %s16_s10 = sshll.u32 %s300_s9, 4  ;;  %s26_s12 = sshll.u32 %s301_s11, 4  ;;  %s17_s10 = int_to_ptr.vmem [resolvable:$true] %s16_s10  ;;  %s27_s12 = int_to_ptr.vmem [resolvable:$true] %s26_s12 }
   0x4   :  { %s242_s13 = scalar_lea.vmem %s17_s10, 32  ;;  %p247_p1 = scmp.lt.s32.totalorder %s17_s10, %s17_s10 }
   0x5   :  { %p243_p0 = scmp.ne.s32.totalorder %s17_s10, %s242_s13  ;;  %p248_p2 = scmp.lt.s32.totalorder %s242_s13, %s242_s13 }
   0x7   :  { %p249_p3 = por %p248_p2, %p247_p1 }
   0x9   :  { %p250_p4 = pnand %p249_p3, %p243_p0 }
   0xb   :  { %253 = shalt.err (!%p250_p4)
}
   0xc   :  { %19 = dma.hbm_to_vmem [thread:$0]  %s350_s0, 32, %s17_s10, [#allocation3]  }
   0xd   :  { %s262_s16 = scalar_lea.vmem %s27_s12, 256  ;;  %p267_p6 = scmp.lt.s32.totalorder %s27_s12, %s27_s12 }
   0xe   :  { %p263_p5 = scmp.ne.s32.totalorder %s27_s12, %s262_s16  ;;  %p268_p7 = scmp.lt.s32.totalorder %s262_s16, %s262_s16 }
  0x10   :  { %p269_p8 = por %p268_p7, %p267_p6 }
  0x12   :  { %p270_p9 = pnand %p269_p8, %p263_p5 }
  0x14   :  { %273 = shalt.err (!%p270_p9)
}
  0x15   :  { %29 = dma.hbm_to_vmem [thread:$0]  %s351_s1, 256, %s27_s12, [#allocation6]  }
  0x16   :  { %294 = dma.done.wait [#allocation3], 32  }
  0x17   :  { %295 = vsyncadd [#allocation3], 4294967264 }
  0x18   :  { %296 = dma.done.wait [#allocation6], 256  }
  0x19   :  { %297 = vsyncadd [#allocation6], 4294967040  ;;  %v47_v0 = vlaneseq  ;;  %v302_v1 = vmov 1983009808   ;;  %v39_v6 = vld [vmem:[#allocation5] sm:$0xff]  ;;  %v40_v7 = vld [vmem:[#allocation5 + $0x8] sm:$0xff] }
  0x1a   :  { %v45_v2 = vunpack.c.l.s4 %v302_v1  ;;  %v43_v8 = vcombine.high %v39_v6, %v39_v6  ;;  %vm85_vm0 = vcmask 1041408   ;;  %v60_v12 = vcombine.high %v40_v7, %v40_v7  ;;  %v38_v33 = vld [vmem:[#allocation2] sm:$0x3]  ;;  %s304_s0 = smov 2   ;;  %s306_s1 = smov 127  }
  0x1b   :  { %v48_v3 = vshrl.u32 %v47_v0, 7  ;;  %v303_v34 = vmov 2   ;;  %v305_v35 = vmov 1   ;;  %v109_v37 = vsub.f32 1.0, %v38_v33  ;;  %s307_s19 = smov [#allocation7]  }
  0x1c   :  { %v46_v4 = vunpack.c.0.s8 %v45_v2  ;;  %229 = vset.pattern.permute.xlu1 %v303_v34  ;;  %231 = vset.pattern.permute.xlu0 %v305_v35  ;;  %s211_s20 = sshll.u32 %s307_s19, 4  ;;  %s212_s20 = int_to_ptr.vmem [resolvable:$true] %s211_s20 }
  0x1d   :  { %s274_s21 = scalar_lea.vmem %s212_s20, 256  ;;  %p279_p11 = scmp.lt.s32.totalorder %s212_s20, %s212_s20 }
  0x1e   :  { %v329_v5 = vsub.s32 %v46_v4, %v48_v3  ;;  %p275_p10 = scmp.ne.s32.totalorder %s212_s20, %s274_s21  ;;  %p280_p12 = scmp.lt.s32.totalorder %s274_s21, %s274_s21 }
  0x20   :  { %v50_v9 = vrot.slane %v39_v6, %v329_v5  ;;  %v57_v10 = vrot.slane %v43_v8, %v329_v5  ;;  %v67_v13 = vrot.slane %v40_v7, %v329_v5  ;;  %v74_v19 = vrot.slane %v60_v12, %v329_v5  ;;  %p281_p13 = por %p280_p12, %p279_p11 }
  0x22   :  { %v58_v11 = vcombine.high %v50_v9, %v50_v9  ;;  %v86_v14 = vsel %vm85_vm0, %v50_v9, 0.0  ;;  %v59_v15 = vcombine.high %v57_v10, %v57_v10  ;;  %v89_v17 = vsel %vm85_vm0, %v57_v10, 0.0  ;;  %p282_p0 = pnand %p281_p13, %p275_p10 }
  0x23   :  { %v75_v20 = vcombine.high %v67_v13, %v67_v13  ;;  %v93_v23 = vsel %vm85_vm0, %v67_v13, 0.0  ;;  %v76_v25 = vcombine.high %v74_v19, %v74_v19  ;;  %v97_v28 = vsel %vm85_vm0, %v74_v19, 0.0 }
  0x24   :  { %v87_v16 = vsel %vm85_vm0, %v58_v11, 0.0  ;;  %v91_v21 = vsel %vm85_vm0, %v59_v15, 0.0 }
  0x25   :  { %v88_v18 = vadd.f32 %v87_v16, %v86_v14  ;;  %v95_v26 = vsel %vm85_vm0, %v75_v20, 0.0  ;;  %v99_v30 = vsel %vm85_vm0, %v76_v25, 0.0 }
  0x27   :  { %v90_v22 = vadd.f32 %v89_v17, %v88_v18 }
  0x29   :  { %v92_v24 = vadd.f32 %v91_v21, %v90_v22 }
  0x2b   :  { %v94_v27 = vadd.f32 %v93_v23, %v92_v24 }
  0x2d   :  { %v96_v29 = vadd.f32 %v95_v26, %v94_v27 }
  0x2f   :  { %v98_v31 = vadd.f32 %v97_v28, %v96_v29 }
  0x31   :  { %v100_v32 = vadd.f32 %v99_v30, %v98_v31 }
  0x33   :  { %101 = vadd.xlane.f32.xlu0 %v100_v32 }
  0x49   :  { %105 = vrot.lane.b32.xlu0 %v38_v33, %s304_s0 }
  0xbc   :  { %v102_v36 = vpop.xlane.xlu0 %101 }
  0xbd   :  { %v103_v39 = vmul.f32 0.0009765625, %v102_v36 }
  0xc0   :  { %v106_v38 = vpop.permute.xlu0 %105 }
  0xc1   :  { %v110_v40 = vmul.f32 %v109_v37, %v106_v38  ;;  %v108_v42 = vmul.f32 %v106_v38, %v38_v33 }
  0xc3   :  { %v111_v41 = vmul.f32 %v110_v40, %v103_v39 }
  0xc5   :  { %113 = vrot.lane.b32.xlu1 %v111_v41, %s306_s1 }
  0xc9   :  { %119 = vperm.xlu1 %229, %v108_v42  }
  0xcd   :  { %230 = vset.pattern.permute.xlu1 %v305_v35 }
 0x137   :  { %v114_v43 = vpop.permute.xlu1 %113 }
 0x138   :  { %v116_v44 = vadd.f32 %v114_v43, %v38_v33 }
 0x13a   :  { %132 = vperm.xlu1 %230, %v116_v44  }
 0x144   :  { %v120_v45 = vpop.permute.xlu1 %119 }
 0x145   :  { %v122_v46 = vmul.f32 %v120_v45, %v50_v9  ;;  %v123_v47 = vmul.f32 %v120_v45, %v58_v11  ;;  %v124_v48 = vmul.f32 %v120_v45, %v57_v10  ;;  %v125_v49 = vmul.f32 %v120_v45, %v59_v15 }
 0x146   :  { %v126_v51 = vmul.f32 %v120_v45, %v67_v13  ;;  %v127_v52 = vmul.f32 %v120_v45, %v75_v20  ;;  %v128_v53 = vmul.f32 %v120_v45, %v74_v19  ;;  %v129_v54 = vmul.f32 %v120_v45, %v76_v25 }
 0x1b5   :  { %v133_v50 = vpop.permute.xlu1 %132 }
 0x1b6   :  { %v135_v55 = vadd.f32 %v133_v50, %v122_v46  ;;  %v136_v56 = vadd.f32 %v133_v50, %v123_v47  ;;  %v137_v57 = vadd.f32 %v133_v50, %v124_v48  ;;  %v138_v58 = vadd.f32 %v133_v50, %v125_v49 }
 0x1b7   :  { %v139_v59 = vadd.f32 %v133_v50, %v126_v51  ;;  %v140_v60 = vadd.f32 %v133_v50, %v127_v52  ;;  %v141_v61 = vadd.f32 %v133_v50, %v128_v53  ;;  %v142_v62 = vadd.f32 %v133_v50, %v129_v54 }
 0x1b8   :  { %v143_v63 = vmax.f32 %v135_v55, 0.0  ;;  %v144_v0 = vmax.f32 %v136_v56, 0.0  ;;  %v145_v1 = vmax.f32 %v137_v57, 0.0  ;;  %v146_v2 = vmax.f32 %v138_v58, 0.0 }
 0x1b9   :  { %v147_v3 = vmax.f32 %v139_v59, 0.0  ;;  %v148_v4 = vmax.f32 %v140_v60, 0.0  ;;  %v149_v6 = vmax.f32 %v141_v61, 0.0  ;;  %v150_v7 = vmax.f32 %v142_v62, 0.0 }
 0x1ba   :  { %v151_v8 = vmin.f32 %v143_v63, 1.0  ;;  %v152_v9 = vmin.f32 %v144_v0, 1.0  ;;  %v153_v10 = vmin.f32 %v145_v1, 1.0  ;;  %v154_v11 = vmin.f32 %v146_v2, 1.0 }
 0x1bb   :  { %v155_v12 = vmin.f32 %v147_v3, 1.0  ;;  %v156_v13 = vmin.f32 %v148_v4, 1.0  ;;  %v157_v14 = vmin.f32 %v149_v6, 1.0  ;;  %v158_v15 = vmin.f32 %v150_v7, 1.0 }
 0x1bc   :  { %v167_v16 = vcombine.low %v151_v8, %v152_v9  ;;  %v168_v17 = vcombine.low %v153_v10, %v154_v11 }
 0x1bd   :  { %v184_v18 = vcombine.low %v155_v12, %v156_v13  ;;  %v185_v19 = vcombine.low %v157_v14, %v158_v15 }
 0x1be   :  { %v175_v20 = vrot.slane %v167_v16, %v329_v5  ;;  %v182_v21 = vrot.slane %v168_v17, %v329_v5 }
 0x1bf   :  { %v192_v22 = vrot.slane %v184_v18, %v329_v5  ;;  %v199_v23 = vrot.slane %v185_v19, %v329_v5 }
 0x1c0   :  { %v183_v24 = vcombine.low %v175_v20, %v182_v21 }
 0x1c1   :  { %v200_v25 = vcombine.low %v192_v22, %v199_v23 }
 0x1c2   :  { %203 = vst [vmem:[#allocation7] sm:$0xff] %v183_v24 }
 0x1c3   :  { %204 = vst [vmem:[#allocation7 + $0x8] sm:$0xff] %v200_v25 }
 0x1c4   :  { %285 = shalt.err (!%p282_p0)
}
 0x1c5   :  { %214 = dma.vmem_to_hbm [thread:$0]  %s212_s20, 256, %s352_s2, [#allocation4]  }
 0x1c6   :  { %298 = dma.done.wait [#allocation4], 256  }
 0x1c7   :  { %299 = vsyncadd [#allocation4], 4294967040 }
 0x1c8   :  { %218 = vsyncpa [#allocation3], 1 }
 0x1c9   :  { %219 = vsyncpa [#allocation6], 1 }
 0x1ca   :  { %220 = vsyncpa [#allocation4], 1 }

</bundles_post_ra>
